<compile_context>
chip_gen: v7x
topology: tpu7x:2x2x1
jax: 0.10.0
libtpu: 0.0.40
codegen_flags: <defaults>
</compile_context>

<pallas_src>
import functools

import jax
import jax.numpy as jnp
from jax.experimental import pallas as pl
from jax.experimental.pallas import tpu as pltpu


def _lstm_encdec_kernel(x2d_ref, wx_ref, wh_ref, b_ref, out_ref,
                        xproj_ref, hbuf_ref, *, S, N, T, E, H):
    f32, bf16 = jnp.float32, jnp.bfloat16
    H4 = 4 * H

    # Packed recurrent / output weights (static row slices, bf16, loaded once).
    whh_e = wh_ref[0 * H:1 * H, :]          # (H, 4H)  encoder recurrent (gate-col scaled)
    whh_d = wh_ref[1 * H:2 * H, :]          # (H, 4H)  decoder recurrent (gate-col scaled)
    wdf   = wh_ref[2 * H:3 * H, :]          # (H, 4H)  fused decoder input-proj + Linear
    wlin  = wh_ref[3 * H:4 * H, 0:E]        # (H, E)   output Linear (unscaled)

    # Packed f32 constants; every broadcast hoisted out of the recurrences.
    b_x_b    = jnp.broadcast_to(b_ref[0:1, :], (S * N, 2 * H4))   # [b_e | b_d] (scaled)
    bdf_b    = jnp.broadcast_to(b_ref[1:2, 0:H4], (N, H4))
    post_mul = jnp.broadcast_to(b_ref[1:2, H4:2 * H4], (N, H4))   # 0.5 on i/f/o, 1 on g
    blin_b   = jnp.broadcast_to(b_ref[2:3, 0:E], (T * N, E))
    post_add = jnp.broadcast_to(b_ref[2:3, H4:2 * H4], (N, H4))   # 0.5 on i/f/o, 0 on g

    def lstm_step(gates, c):
        # sigmoid(x) = 0.5*tanh(0.5x)+0.5; the 0.5 pre-scale on i/f/o gate columns is
        # folded into the weights/biases, so the packed (N, 4H) gate tile needs ONE tanh
        # (plus one for c_new) per step.  Post-affine uses hoisted lane constants.
        t = jnp.tanh(gates)
        act = t * post_mul + post_add
        i = act[:, 0 * H:1 * H]
        f = act[:, 1 * H:2 * H]
        g = act[:, 2 * H:3 * H]
        o = act[:, 3 * H:4 * H]
        c_new = f * c + i * g
        h_new = o * jnp.tanh(c_new)
        return h_new, c_new

    # ---- ALL input projections in ONE MXU call, off the recurrent chain:
    #      columns [0, 4H)  = x_t @ wih_e + b_e   (encoder, all S steps)
    #      columns [4H, 8H) = x_t @ wih_d + b_d   (decoder step-0 seed x[S-1])
    xproj_ref[...] = (jnp.dot(x2d_ref[...], wx_ref[...],
                              preferred_element_type=f32) + b_x_b)    # (S*N, 8H)

    # ---- Encoder recurrence (fully unrolled; zero initial state):
    #      one h @ whh_e matmul per step on the serial chain.
    h = jnp.zeros((N, H), f32)
    c = jnp.zeros((N, H), f32)
    for t in range(S):
        gates = (xproj_ref[t * N:(t + 1) * N, 0:H4]
                 + jnp.dot(h.astype(bf16), whh_e, preferred_element_type=f32))
        h, c = lstm_step(gates, c)

    # ---- Decoder step 0 (seeded with x[S-1]): its input projection + bias were already
    #      produced by the up-front matmul -> a single on-chain matmul, like every step.
    gates0 = (xproj_ref[(S - 1) * N:S * N, H4:2 * H4]
              + jnp.dot(h.astype(bf16), whh_d, preferred_element_type=f32))
    h, c = lstm_step(gates0, c)
    hbuf_ref[0:N, :] = h

    # ---- Decoder steps 1..T-1: input projection algebraically fused with the output
    #      Linear (wdf = wlin@wih_d + whh_d): one matmul per step; the Linear itself is
    #      hoisted out of the loop entirely (h stashed off-chain).
    for t in range(1, T):
        gates = jnp.dot(h.astype(bf16), wdf, preferred_element_type=f32) + bdf_b
        h, c = lstm_step(gates, c)
        hbuf_ref[t * N:(t + 1) * N, :] = h

    # ---- Output Linear for all T steps at once: one (T*N, H) @ (H, E) matmul and one
    #      dense (T*N, E) store (no per-step masked stores).
    h_all = hbuf_ref[...].astype(bf16)
    out_ref[...] = jnp.dot(h_all, wlin, preferred_element_type=f32) + blin_b


def lstm_encoder_decoder(x, params, target_len):
    """x: (S, N, E) float32. Returns (target_len, N, E) float32."""
    S, N, E = x.shape
    H = params["whh_e"].shape[1]
    T = target_len
    H4 = 4 * H
    assert E <= H4, "packing assumes input_size <= 4*hidden_size"
    f32, bf16 = jnp.float32, jnp.bfloat16

    # Pre-transposed weights / fused LSTM biases (f32 prep, done once per call).
    wih_e_t = params["wih_e"].T.astype(f32)                      # (E, 4H)
    whh_e_t = params["whh_e"].T.astype(f32)                      # (H, 4H)
    b_e = (params["bih_e"] + params["bhh_e"])[None].astype(f32)  # (1, 4H)
    wih_d_t = params["wih_d"].T.astype(f32)                      # (E, 4H)
    whh_d_t = params["whh_d"].T.astype(f32)                      # (H, 4H)
    b_d = (params["bih_d"] + params["bhh_d"])[None].astype(f32)  # (1, 4H)
    wlin_t = params["wlin"].T.astype(f32)                        # (H, E)
    blin = params["blin"][None].astype(f32)                      # (1, E)

    # Decoder t>=1: input projection fused with the output Linear (exact algebra).
    wdf = wlin_t @ wih_d_t + whh_d_t                             # (H, 4H)
    bdf = blin @ wih_d_t + b_d                                   # (1, 4H)

    # sigmoid(x) = 0.5*tanh(0.5x)+0.5 -> fold the 0.5 pre-scale into the i/f/o gate
    # columns (g keeps 1.0) of every gate weight/bias; kernel does one tanh per tile.
    scale = jnp.concatenate([jnp.full((2 * H,), 0.5, f32),
                             jnp.ones((H,), f32),
                             jnp.full((H,), 0.5, f32)])          # (4H,)  pre-scale == post-mul
    post_add = jnp.concatenate([jnp.full((2 * H,), 0.5, f32),
                                jnp.zeros((H,), f32),
                                jnp.full((H,), 0.5, f32)])       # (4H,)

    # Packed x-projection weight: encoder + decoder-step-0 input projections
    # -> a single MXU call in the kernel.  (E, 8H) bf16.
    wx = jnp.concatenate([wih_e_t * scale, wih_d_t * scale], axis=1).astype(bf16)
    b_x = jnp.concatenate([b_e * scale, b_d * scale], axis=1)    # (1, 8H)

    # Packed recurrent / output weight: [whh_e; whh_d; wdf; wlin (col-padded)] = (4H, 4H) bf16.
    wlin_pad = jnp.pad(wlin_t, ((0, 0), (0, H4 - E)))
    wh = jnp.concatenate([whh_e_t * scale, whh_d_t * scale, wdf * scale, wlin_pad],
                         axis=0).astype(bf16)

    # Packed f32 constants (one small DMA):
    #   row0: [b_e_s | b_d_s]   row1: [bdf_s | post_mul]   row2: [blin,pad | post_add]
    b_all = jnp.concatenate([
        b_x,
        jnp.concatenate([bdf * scale, scale[None, :]], axis=1),
        jnp.concatenate([jnp.pad(blin, ((0, 0), (0, H4 - E))), post_add[None, :]], axis=1),
    ], axis=0).astype(f32)                                       # (3, 8H)

    # Flatten (S, N, E) -> (S*N, E) in the wrapper so the x-projection is one matmul.
    x2d = x.reshape(S * N, E).astype(bf16)

    vmem = pl.BlockSpec(memory_space=pltpu.MemorySpace.VMEM)
    kernel = functools.partial(_lstm_encdec_kernel, S=S, N=N, T=T, E=E, H=H)

    out2d = pl.pallas_call(
        kernel,
        out_shape=jax.ShapeDtypeStruct((T * N, E), f32),
        in_specs=[vmem] * 4,
        out_specs=vmem,
        scratch_shapes=[pltpu.VMEM((S * N, 8 * H), f32),   # packed x-projections
                        pltpu.VMEM((T * N, H), f32)],      # decoder hidden states
    )(x2d, wx, wh, b_all)
    return out2d.reshape(T, N, E)


def _reference(x, params, target_len):
    """Pure-JAX f32 reference mirroring the PyTorch forward."""
    H = params["whh_e"].shape[1]

    def cell(x_t, h, c, wih, whh, bih, bhh):
        g = x_t @ wih.T + bih + h @ whh.T + bhh
        i, f, gg, o = jnp.split(g, 4, axis=-1)
        c_new = jax.nn.sigmoid(f) * c + jax.nn.sigmoid(i) * jnp.tanh(gg)
        h_new = jax.nn.sigmoid(o) * jnp.tanh(c_new)
        return h_new, c_new

    N = x.shape[1]
    h = jnp.zeros((N, H), jnp.float32)
    c = jnp.zeros((N, H), jnp.float32)
    for t in range(x.shape[0]):
        h, c = cell(x[t], h, c, params["wih_e"], params["whh_e"],
                    params["bih_e"], params["bhh_e"])
    inp = x[-1]
    outs = []
    for _ in range(target_len):
        h, c = cell(inp, h, c, params["wih_d"], params["whh_d"],
                    params["bih_d"], params["bhh_d"])
        out_d = h @ params["wlin"].T + params["blin"]
        outs.append(out_d)
        inp = out_d
    return jnp.stack(outs, axis=0)


def init_params(key, input_size, hidden_size):
    E, H = input_size, hidden_size
    k = 1.0 / jnp.sqrt(H)
    keys = jax.random.split(key, 10)
    u = lambda kk, shape: jax.random.uniform(kk, shape, jnp.float32, -k, k)
    return {
        "wih_e": u(keys[0], (4 * H, E)),
        "whh_e": u(keys[1], (4 * H, H)),
        "bih_e": u(keys[2], (4 * H,)),
        "bhh_e": u(keys[3], (4 * H,)),
        "wih_d": u(keys[4], (4 * H, E)),
        "whh_d": u(keys[5], (4 * H, H)),
        "bih_d": u(keys[6], (4 * H,)),
        "bhh_d": u(keys[7], (4 * H,)),
        "wlin": u(keys[8], (E, H)),
        "blin": u(keys[9], (E,)),
    }


if __name__ == "__main__":
    S, N, E, H = 8, 2, 16, 32
    target_len = 4

    key = jax.random.PRNGKey(0)
    kx, kp = jax.random.split(key)
    x = jax.random.normal(kx, (S, N, E), jnp.float32)
    params = init_params(kp, E, H)

    run = jax.jit(functools.partial(lstm_encoder_decoder, target_len=target_len))
    out = run(x, params)
    jax.block_until_ready(out)

    ref = _reference(x, params, target_len)
    assert out.shape == (target_len, N, E)
    # bf16 MXU operands + algebraic decoder fusion -> looser tolerance than pure f32.
    max_err = float(jnp.max(jnp.abs(out - ref)))
    assert max_err < 3e-2, f"mismatch vs reference: max abs err = {max_err}"

    print("KERNEL_OK")
</pallas_src>

<mosaic_0001>
module attributes {stable_mosaic.version = 11 : i64} {
  func.func @_lstm_encdec_kernel(%arg0: memref<16x16xbf16, #tpu.memory_space<vmem>>, %arg1: memref<16x256xbf16, #tpu.memory_space<vmem>>, %arg2: memref<128x128xbf16, #tpu.memory_space<vmem>>, %arg3: memref<3x256xf32, #tpu.memory_space<vmem>>, %arg4: memref<8x16xf32, #tpu.memory_space<vmem>>, %arg5: memref<16x256xf32, #tpu.memory_space<vmem>>, %arg6: memref<8x32xf32, #tpu.memory_space<vmem>>) attributes {dimension_semantics = [], scalar_prefetch = 0 : i64, scratch_operands = 2 : i64, tpu.core_type = #tpu.core_type<tc>} {
    %c0 = arith.constant 0 : index
    %c0_0 = arith.constant 0 : index
    %0 = vector.load %arg2[%c0, %c0_0] : memref<128x128xbf16, #tpu.memory_space<vmem>>, vector<32x128xbf16>
    %c32 = arith.constant 32 : index
    %c0_1 = arith.constant 0 : index
    %1 = vector.load %arg2[%c32, %c0_1] : memref<128x128xbf16, #tpu.memory_space<vmem>>, vector<32x128xbf16>
    %c64 = arith.constant 64 : index
    %c0_2 = arith.constant 0 : index
    %2 = vector.load %arg2[%c64, %c0_2] : memref<128x128xbf16, #tpu.memory_space<vmem>>, vector<32x128xbf16>
    %c96 = arith.constant 96 : index
    %c0_3 = arith.constant 0 : index
    %3 = vector.load %arg2[%c96, %c0_3] : memref<128x128xbf16, #tpu.memory_space<vmem>>, vector<32x16xbf16>
    %c0_4 = arith.constant 0 : index
    %c0_5 = arith.constant 0 : index
    %4 = vector.load %arg3[%c0_4, %c0_5] : memref<3x256xf32, #tpu.memory_space<vmem>>, vector<1x256xf32>
    %5 = vector.shape_cast %4 : vector<1x256xf32> to vector<1x256xf32>
    %6 = vector.broadcast %5 : vector<1x256xf32> to vector<16x256xf32>
    %c1 = arith.constant 1 : index
    %c0_6 = arith.constant 0 : index
    %7 = vector.load %arg3[%c1, %c0_6] : memref<3x256xf32, #tpu.memory_space<vmem>>, vector<1x128xf32>
    %8 = vector.shape_cast %7 : vector<1x128xf32> to vector<1x128xf32>
    %9 = vector.broadcast %8 : vector<1x128xf32> to vector<2x128xf32>
    %c1_7 = arith.constant 1 : index
    %c128 = arith.constant 128 : index
    %10 = vector.load %arg3[%c1_7, %c128] : memref<3x256xf32, #tpu.memory_space<vmem>>, vector<1x128xf32>
    %11 = vector.shape_cast %10 : vector<1x128xf32> to vector<1x128xf32>
    %12 = vector.broadcast %11 : vector<1x128xf32> to vector<2x128xf32>
    %c2 = arith.constant 2 : index
    %c0_8 = arith.constant 0 : index
    %13 = vector.load %arg3[%c2, %c0_8] : memref<3x256xf32, #tpu.memory_space<vmem>>, vector<1x16xf32>
    %14 = vector.shape_cast %13 : vector<1x16xf32> to vector<1x16xf32>
    %15 = vector.broadcast %14 : vector<1x16xf32> to vector<8x16xf32>
    %c2_9 = arith.constant 2 : index
    %c128_10 = arith.constant 128 : index
    %16 = vector.load %arg3[%c2_9, %c128_10] : memref<3x256xf32, #tpu.memory_space<vmem>>, vector<1x128xf32>
    %17 = vector.shape_cast %16 : vector<1x128xf32> to vector<1x128xf32>
    %18 = vector.broadcast %17 : vector<1x128xf32> to vector<2x128xf32>
    %c0_11 = arith.constant 0 : index
    %c0_12 = arith.constant 0 : index
    %19 = vector.load %arg0[%c0_11, %c0_12] : memref<16x16xbf16, #tpu.memory_space<vmem>>, vector<16x16xbf16>
    %c0_13 = arith.constant 0 : index
    %c0_14 = arith.constant 0 : index
    %20 = vector.load %arg1[%c0_13, %c0_14] : memref<16x256xbf16, #tpu.memory_space<vmem>>, vector<16x256xbf16>
    %cst = arith.constant dense<0.000000e+00> : vector<16x256xf32>
    %21 = tpu.matmul %19, %20, %cst {dimension_numbers = #tpu.dot_dimension_numbers<[1], [0], [0], [1], [0, 0, 1, 1], [], []>} : vector<16x16xbf16>, vector<16x256xbf16>, vector<16x256xf32> -> vector<16x256xf32>
    %22 = arith.addf %21, %6 : vector<16x256xf32>
    %c0_15 = arith.constant 0 : index
    %c0_16 = arith.constant 0 : index
    %23 = vector.load %arg5[%c0_15, %c0_16] : memref<16x256xf32, #tpu.memory_space<vmem>>, vector<16x256xf32>
    tpu.vector_store %arg5[%c0_15, %c0_16], %22 {strides = array<i32>} : memref<16x256xf32, #tpu.memory_space<vmem>>, vector<16x256xf32>,
    %cst_17 = arith.constant 0.000000e+00 : f32
    %24 = vector.broadcast %cst_17 : f32 to vector<2x32xf32>
    %cst_18 = arith.constant 0.000000e+00 : f32
    %25 = vector.broadcast %cst_18 : f32 to vector<2x32xf32>
    %c0_19 = arith.constant 0 : index
    %c0_20 = arith.constant 0 : index
    %26 = vector.load %arg5[%c0_19, %c0_20] : memref<16x256xf32, #tpu.memory_space<vmem>>, vector<2x128xf32>
    %27 = arith.truncf %24 : vector<2x32xf32> to vector<2x32xbf16>
    %cst_21 = arith.constant dense<0.000000e+00> : vector<2x128xf32>
    %28 = tpu.matmul %27, %0, %cst_21 {dimension_numbers = #tpu.dot_dimension_numbers<[1], [0], [0], [1], [0, 0, 1, 1], [], []>} : vector<2x32xbf16>, vector<32x128xbf16>, vector<2x128xf32> -> vector<2x128xf32>
    %29 = arith.addf %26, %28 : vector<2x128xf32>
    %30 = math.tanh %29 : vector<2x128xf32>
    %31 = arith.mulf %30, %12 : vector<2x128xf32>
    %32 = arith.addf %31, %18 : vector<2x128xf32>
    %33 = vector.extract_strided_slice %32 {offsets = [0, 0], sizes = [2, 32], strides = [1, 1]} : vector<2x128xf32> to vector<2x32xf32>
    %34 = vector.extract_strided_slice %32 {offsets = [0, 32], sizes = [2, 32], strides = [1, 1]} : vector<2x128xf32> to vector<2x32xf32>
    %35 = vector.extract_strided_slice %32 {offsets = [0, 64], sizes = [2, 32], strides = [1, 1]} : vector<2x128xf32> to vector<2x32xf32>
    %36 = vector.extract_strided_slice %32 {offsets = [0, 96], sizes = [2, 32], strides = [1, 1]} : vector<2x128xf32> to vector<2x32xf32>
    %37 = arith.mulf %34, %25 : vector<2x32xf32>
    %38 = arith.mulf %33, %35 : vector<2x32xf32>
    %39 = arith.addf %37, %38 : vector<2x32xf32>
    %40 = math.tanh %39 : vector<2x32xf32>
    %41 = arith.mulf %36, %40 : vector<2x32xf32>
    %c2_22 = arith.constant 2 : index
    %c0_23 = arith.constant 0 : index
    %42 = vector.load %arg5[%c2_22, %c0_23] : memref<16x256xf32, #tpu.memory_space<vmem>>, vector<2x128xf32>
    %43 = arith.truncf %41 : vector<2x32xf32> to vector<2x32xbf16>
    %cst_24 = arith.constant dense<0.000000e+00> : vector<2x128xf32>
    %44 = tpu.matmul %43, %0, %cst_24 {dimension_numbers = #tpu.dot_dimension_numbers<[1], [0], [0], [1], [0, 0, 1, 1], [], []>} : vector<2x32xbf16>, vector<32x128xbf16>, vector<2x128xf32> -> vector<2x128xf32>
    %45 = arith.addf %42, %44 : vector<2x128xf32>
    %46 = math.tanh %45 : vector<2x128xf32>
    %47 = arith.mulf %46, %12 : vector<2x128xf32>
    %48 = arith.addf %47, %18 : vector<2x128xf32>
    %49 = vector.extract_strided_slice %48 {offsets = [0, 0], sizes = [2, 32], strides = [1, 1]} : vector<2x128xf32> to vector<2x32xf32>
    %50 = vector.extract_strided_slice %48 {offsets = [0, 32], sizes = [2, 32], strides = [1, 1]} : vector<2x128xf32> to vector<2x32xf32>
    %51 = vector.extract_strided_slice %48 {offsets = [0, 64], sizes = [2, 32], strides = [1, 1]} : vector<2x128xf32> to vector<2x32xf32>
    %52 = vector.extract_strided_slice %48 {offsets = [0, 96], sizes = [2, 32], strides = [1, 1]} : vector<2x128xf32> to vector<2x32xf32>
    %53 = arith.mulf %50, %39 : vector<2x32xf32>
    %54 = arith.mulf %49, %51 : vector<2x32xf32>
    %55 = arith.addf %53, %54 : vector<2x32xf32>
    %56 = math.tanh %55 : vector<2x32xf32>
    %57 = arith.mulf %52, %56 : vector<2x32xf32>
    %c4 = arith.constant 4 : index
    %c0_25 = arith.constant 0 : index
    %58 = vector.load %arg5[%c4, %c0_25] : memref<16x256xf32, #tpu.memory_space<vmem>>, vector<2x128xf32>
    %59 = arith.truncf %57 : vector<2x32xf32> to vector<2x32xbf16>
    %cst_26 = arith.constant dense<0.000000e+00> : vector<2x128xf32>
    %60 = tpu.matmul %59, %0, %cst_26 {dimension_numbers = #tpu.dot_dimension_numbers<[1], [0], [0], [1], [0, 0, 1, 1], [], []>} : vector<2x32xbf16>, vector<32x128xbf16>, vector<2x128xf32> -> vector<2x128xf32>
    %61 = arith.addf %58, %60 : vector<2x128xf32>
    %62 = math.tanh %61 : vector<2x128xf32>
    %63 = arith.mulf %62, %12 : vector<2x128xf32>
    %64 = arith.addf %63, %18 : vector<2x128xf32>
    %65 = vector.extract_strided_slice %64 {offsets = [0, 0], sizes = [2, 32], strides = [1, 1]} : vector<2x128xf32> to vector<2x32xf32>
    %66 = vector.extract_strided_slice %64 {offsets = [0, 32], sizes = [2, 32], strides = [1, 1]} : vector<2x128xf32> to vector<2x32xf32>
    %67 = vector.extract_strided_slice %64 {offsets = [0, 64], sizes = [2, 32], strides = [1, 1]} : vector<2x128xf32> to vector<2x32xf32>
    %68 = vector.extract_strided_slice %64 {offsets = [0, 96], sizes = [2, 32], strides = [1, 1]} : vector<2x128xf32> to vector<2x32xf32>
    %69 = arith.mulf %66, %55 : vector<2x32xf32>
    %70 = arith.mulf %65, %67 : vector<2x32xf32>
    %71 = arith.addf %69, %70 : vector<2x32xf32>
    %72 = math.tanh %71 : vector<2x32xf32>
    %73 = arith.mulf %68, %72 : vector<2x32xf32>
    %c6 = arith.constant 6 : index
    %c0_27 = arith.constant 0 : index
    %74 = vector.load %arg5[%c6, %c0_27] : memref<16x256xf32, #tpu.memory_space<vmem>>, vector<2x128xf32>
    %75 = arith.truncf %73 : vector<2x32xf32> to vector<2x32xbf16>
    %cst_28 = arith.constant dense<0.000000e+00> : vector<2x128xf32>
    %76 = tpu.matmul %75, %0, %cst_28 {dimension_numbers = #tpu.dot_dimension_numbers<[1], [0], [0], [1], [0, 0, 1, 1], [], []>} : vector<2x32xbf16>, vector<32x128xbf16>, vector<2x128xf32> -> vector<2x128xf32>
    %77 = arith.addf %74, %76 : vector<2x128xf32>
    %78 = math.tanh %77 : vector<2x128xf32>
    %79 = arith.mulf %78, %12 : vector<2x128xf32>
    %80 = arith.addf %79, %18 : vector<2x128xf32>
    %81 = vector.extract_strided_slice %80 {offsets = [0, 0], sizes = [2, 32], strides = [1, 1]} : vector<2x128xf32> to vector<2x32xf32>
    %82 = vector.extract_strided_slice %80 {offsets = [0, 32], sizes = [2, 32], strides = [1, 1]} : vector<2x128xf32> to vector<2x32xf32>
    %83 = vector.extract_strided_slice %80 {offsets = [0, 64], sizes = [2, 32], strides = [1, 1]} : vector<2x128xf32> to vector<2x32xf32>
    %84 = vector.extract_strided_slice %80 {offsets = [0, 96], sizes = [2, 32], strides = [1, 1]} : vector<2x128xf32> to vector<2x32xf32>
    %85 = arith.mulf %82, %71 : vector<2x32xf32>
    %86 = arith.mulf %81, %83 : vector<2x32xf32>
    %87 = arith.addf %85, %86 : vector<2x32xf32>
    %88 = math.tanh %87 : vector<2x32xf32>
    %89 = arith.mulf %84, %88 : vector<2x32xf32>
    %c8 = arith.constant 8 : index
    %c0_29 = arith.constant 0 : index
    %90 = vector.load %arg5[%c8, %c0_29] : memref<16x256xf32, #tpu.memory_space<vmem>>, vector<2x128xf32>
    %91 = arith.truncf %89 : vector<2x32xf32> to vector<2x32xbf16>
    %cst_30 = arith.constant dense<0.000000e+00> : vector<2x128xf32>
    %92 = tpu.matmul %91, %0, %cst_30 {dimension_numbers = #tpu.dot_dimension_numbers<[1], [0], [0], [1], [0, 0, 1, 1], [], []>} : vector<2x32xbf16>, vector<32x128xbf16>, vector<2x128xf32> -> vector<2x128xf32>
    %93 = arith.addf %90, %92 : vector<2x128xf32>
    %94 = math.tanh %93 : vector<2x128xf32>
    %95 = arith.mulf %94, %12 : vector<2x128xf32>
    %96 = arith.addf %95, %18 : vector<2x128xf32>
    %97 = vector.extract_strided_slice %96 {offsets = [0, 0], sizes = [2, 32], strides = [1, 1]} : vector<2x128xf32> to vector<2x32xf32>
    %98 = vector.extract_strided_slice %96 {offsets = [0, 32], sizes = [2, 32], strides = [1, 1]} : vector<2x128xf32> to vector<2x32xf32>
    %99 = vector.extract_strided_slice %96 {offsets = [0, 64], sizes = [2, 32], strides = [1, 1]} : vector<2x128xf32> to vector<2x32xf32>
    %100 = vector.extract_strided_slice %96 {offsets = [0, 96], sizes = [2, 32], strides = [1, 1]} : vector<2x128xf32> to vector<2x32xf32>
    %101 = arith.mulf %98, %87 : vector<2x32xf32>
    %102 = arith.mulf %97, %99 : vector<2x32xf32>
    %103 = arith.addf %101, %102 : vector<2x32xf32>
    %104 = math.tanh %103 : vector<2x32xf32>
    %105 = arith.mulf %100, %104 : vector<2x32xf32>
    %c10 = arith.constant 10 : index
    %c0_31 = arith.constant 0 : index
    %106 = vector.load %arg5[%c10, %c0_31] : memref<16x256xf32, #tpu.memory_space<vmem>>, vector<2x128xf32>
    %107 = arith.truncf %105 : vector<2x32xf32> to vector<2x32xbf16>
    %cst_32 = arith.constant dense<0.000000e+00> : vector<2x128xf32>
    %108 = tpu.matmul %107, %0, %cst_32 {dimension_numbers = #tpu.dot_dimension_numbers<[1], [0], [0], [1], [0, 0, 1, 1], [], []>} : vector<2x32xbf16>, vector<32x128xbf16>, vector<2x128xf32> -> vector<2x128xf32>
    %109 = arith.addf %106, %108 : vector<2x128xf32>
    %110 = math.tanh %109 : vector<2x128xf32>
    %111 = arith.mulf %110, %12 : vector<2x128xf32>
    %112 = arith.addf %111, %18 : vector<2x128xf32>
    %113 = vector.extract_strided_slice %112 {offsets = [0, 0], sizes = [2, 32], strides = [1, 1]} : vector<2x128xf32> to vector<2x32xf32>
    %114 = vector.extract_strided_slice %112 {offsets = [0, 32], sizes = [2, 32], strides = [1, 1]} : vector<2x128xf32> to vector<2x32xf32>
    %115 = vector.extract_strided_slice %112 {offsets = [0, 64], sizes = [2, 32], strides = [1, 1]} : vector<2x128xf32> to vector<2x32xf32>
    %116 = vector.extract_strided_slice %112 {offsets = [0, 96], sizes = [2, 32], strides = [1, 1]} : vector<2x128xf32> to vector<2x32xf32>
    %117 = arith.mulf %114, %103 : vector<2x32xf32>
    %118 = arith.mulf %113, %115 : vector<2x32xf32>
    %119 = arith.addf %117, %118 : vector<2x32xf32>
    %120 = math.tanh %119 : vector<2x32xf32>
    %121 = arith.mulf %116, %120 : vector<2x32xf32>
    %c12 = arith.constant 12 : index
    %c0_33 = arith.constant 0 : index
    %122 = vector.load %arg5[%c12, %c0_33] : memref<16x256xf32, #tpu.memory_space<vmem>>, vector<2x128xf32>
    %123 = arith.truncf %121 : vector<2x32xf32> to vector<2x32xbf16>
    %cst_34 = arith.constant dense<0.000000e+00> : vector<2x128xf32>
    %124 = tpu.matmul %123, %0, %cst_34 {dimension_numbers = #tpu.dot_dimension_numbers<[1], [0], [0], [1], [0, 0, 1, 1], [], []>} : vector<2x32xbf16>, vector<32x128xbf16>, vector<2x128xf32> -> vector<2x128xf32>
    %125 = arith.addf %122, %124 : vector<2x128xf32>
    %126 = math.tanh %125 : vector<2x128xf32>
    %127 = arith.mulf %126, %12 : vector<2x128xf32>
    %128 = arith.addf %127, %18 : vector<2x128xf32>
    %129 = vector.extract_strided_slice %128 {offsets = [0, 0], sizes = [2, 32], strides = [1, 1]} : vector<2x128xf32> to vector<2x32xf32>
    %130 = vector.extract_strided_slice %128 {offsets = [0, 32], sizes = [2, 32], strides = [1, 1]} : vector<2x128xf32> to vector<2x32xf32>
    %131 = vector.extract_strided_slice %128 {offsets = [0, 64], sizes = [2, 32], strides = [1, 1]} : vector<2x128xf32> to vector<2x32xf32>
    %132 = vector.extract_strided_slice %128 {offsets = [0, 96], sizes = [2, 32], strides = [1, 1]} : vector<2x128xf32> to vector<2x32xf32>
    %133 = arith.mulf %130, %119 : vector<2x32xf32>
    %134 = arith.mulf %129, %131 : vector<2x32xf32>
    %135 = arith.addf %133, %134 : vector<2x32xf32>
    %136 = math.tanh %135 : vector<2x32xf32>
    %137 = arith.mulf %132, %136 : vector<2x32xf32>
    %c14 = arith.constant 14 : index
    %c0_35 = arith.constant 0 : index
    %138 = vector.load %arg5[%c14, %c0_35] : memref<16x256xf32, #tpu.memory_space<vmem>>, vector<2x128xf32>
    %139 = arith.truncf %137 : vector<2x32xf32> to vector<2x32xbf16>
    %cst_36 = arith.constant dense<0.000000e+00> : vector<2x128xf32>
    %140 = tpu.matmul %139, %0, %cst_36 {dimension_numbers = #tpu.dot_dimension_numbers<[1], [0], [0], [1], [0, 0, 1, 1], [], []>} : vector<2x32xbf16>, vector<32x128xbf16>, vector<2x128xf32> -> vector<2x128xf32>
    %141 = arith.addf %138, %140 : vector<2x128xf32>
    %142 = math.tanh %141 : vector<2x128xf32>
    %143 = arith.mulf %142, %12 : vector<2x128xf32>
    %144 = arith.addf %143, %18 : vector<2x128xf32>
    %145 = vector.extract_strided_slice %144 {offsets = [0, 0], sizes = [2, 32], strides = [1, 1]} : vector<2x128xf32> to vector<2x32xf32>
    %146 = vector.extract_strided_slice %144 {offsets = [0, 32], sizes = [2, 32], strides = [1, 1]} : vector<2x128xf32> to vector<2x32xf32>
    %147 = vector.extract_strided_slice %144 {offsets = [0, 64], sizes = [2, 32], strides = [1, 1]} : vector<2x128xf32> to vector<2x32xf32>
    %148 = vector.extract_strided_slice %144 {offsets = [0, 96], sizes = [2, 32], strides = [1, 1]} : vector<2x128xf32> to vector<2x32xf32>
    %149 = arith.mulf %146, %135 : vector<2x32xf32>
    %150 = arith.mulf %145, %147 : vector<2x32xf32>
    %151 = arith.addf %149, %150 : vector<2x32xf32>
    %152 = math.tanh %151 : vector<2x32xf32>
    %153 = arith.mulf %148, %152 : vector<2x32xf32>
    %c14_37 = arith.constant 14 : index
    %c128_38 = arith.constant 128 : index
    %154 = vector.load %arg5[%c14_37, %c128_38] : memref<16x256xf32, #tpu.memory_space<vmem>>, vector<2x128xf32>
    %155 = arith.truncf %153 : vector<2x32xf32> to vector<2x32xbf16>
    %cst_39 = arith.constant dense<0.000000e+00> : vector<2x128xf32>
    %156 = tpu.matmul %155, %1, %cst_39 {dimension_numbers = #tpu.dot_dimension_numbers<[1], [0], [0], [1], [0, 0, 1, 1], [], []>} : vector<2x32xbf16>, vector<32x128xbf16>, vector<2x128xf32> -> vector<2x128xf32>
    %157 = arith.addf %154, %156 : vector<2x128xf32>
    %158 = math.tanh %157 : vector<2x128xf32>
    %159 = arith.mulf %158, %12 : vector<2x128xf32>
    %160 = arith.addf %159, %18 : vector<2x128xf32>
    %161 = vector.extract_strided_slice %160 {offsets = [0, 0], sizes = [2, 32], strides = [1, 1]} : vector<2x128xf32> to vector<2x32xf32>
    %162 = vector.extract_strided_slice %160 {offsets = [0, 32], sizes = [2, 32], strides = [1, 1]} : vector<2x128xf32> to vector<2x32xf32>
    %163 = vector.extract_strided_slice %160 {offsets = [0, 64], sizes = [2, 32], strides = [1, 1]} : vector<2x128xf32> to vector<2x32xf32>
    %164 = vector.extract_strided_slice %160 {offsets = [0, 96], sizes = [2, 32], strides = [1, 1]} : vector<2x128xf32> to vector<2x32xf32>
    %165 = arith.mulf %162, %151 : vector<2x32xf32>
    %166 = arith.mulf %161, %163 : vector<2x32xf32>
    %167 = arith.addf %165, %166 : vector<2x32xf32>
    %168 = math.tanh %167 : vector<2x32xf32>
    %169 = arith.mulf %164, %168 : vector<2x32xf32>
    %c0_40 = arith.constant 0 : index
    %c0_41 = arith.constant 0 : index
    %170 = vector.load %arg6[%c0_40, %c0_41] : memref<8x32xf32, #tpu.memory_space<vmem>>, vector<2x32xf32>
    tpu.vector_store %arg6[%c0_40, %c0_41], %169 {strides = array<i32>} : memref<8x32xf32, #tpu.memory_space<vmem>>, vector<2x32xf32>,
    %171 = arith.truncf %169 : vector<2x32xf32> to vector<2x32xbf16>
    %cst_42 = arith.constant dense<0.000000e+00> : vector<2x128xf32>
    %172 = tpu.matmul %171, %2, %cst_42 {dimension_numbers = #tpu.dot_dimension_numbers<[1], [0], [0], [1], [0, 0, 1, 1], [], []>} : vector<2x32xbf16>, vector<32x128xbf16>, vector<2x128xf32> -> vector<2x128xf32>
    %173 = arith.addf %172, %9 : vector<2x128xf32>
    %174 = math.tanh %173 : vector<2x128xf32>
    %175 = arith.mulf %174, %12 : vector<2x128xf32>
    %176 = arith.addf %175, %18 : vector<2x128xf32>
    %177 = vector.extract_strided_slice %176 {offsets = [0, 0], sizes = [2, 32], strides = [1, 1]} : vector<2x128xf32> to vector<2x32xf32>
    %178 = vector.extract_strided_slice %176 {offsets = [0, 32], sizes = [2, 32], strides = [1, 1]} : vector<2x128xf32> to vector<2x32xf32>
    %179 = vector.extract_strided_slice %176 {offsets = [0, 64], sizes = [2, 32], strides = [1, 1]} : vector<2x128xf32> to vector<2x32xf32>
    %180 = vector.extract_strided_slice %176 {offsets = [0, 96], sizes = [2, 32], strides = [1, 1]} : vector<2x128xf32> to vector<2x32xf32>
    %181 = arith.mulf %178, %167 : vector<2x32xf32>
    %182 = arith.mulf %177, %179 : vector<2x32xf32>
    %183 = arith.addf %181, %182 : vector<2x32xf32>
    %184 = math.tanh %183 : vector<2x32xf32>
    %185 = arith.mulf %180, %184 : vector<2x32xf32>
    %c2_43 = arith.constant 2 : index
    %c0_44 = arith.constant 0 : index
    %186 = vector.load %arg6[%c2_43, %c0_44] : memref<8x32xf32, #tpu.memory_space<vmem>>, vector<2x32xf32>
    tpu.vector_store %arg6[%c2_43, %c0_44], %185 {strides = array<i32>} : memref<8x32xf32, #tpu.memory_space<vmem>>, vector<2x32xf32>,
    %187 = arith.truncf %185 : vector<2x32xf32> to vector<2x32xbf16>
    %cst_45 = arith.constant dense<0.000000e+00> : vector<2x128xf32>
    %188 = tpu.matmul %187, %2, %cst_45 {dimension_numbers = #tpu.dot_dimension_numbers<[1], [0], [0], [1], [0, 0, 1, 1], [], []>} : vector<2x32xbf16>, vector<32x128xbf16>, vector<2x128xf32> -> vector<2x128xf32>
    %189 = arith.addf %188, %9 : vector<2x128xf32>
    %190 = math.tanh %189 : vector<2x128xf32>
    %191 = arith.mulf %190, %12 : vector<2x128xf32>
    %192 = arith.addf %191, %18 : vector<2x128xf32>
    %193 = vector.extract_strided_slice %192 {offsets = [0, 0], sizes = [2, 32], strides = [1, 1]} : vector<2x128xf32> to vector<2x32xf32>
    %194 = vector.extract_strided_slice %192 {offsets = [0, 32], sizes = [2, 32], strides = [1, 1]} : vector<2x128xf32> to vector<2x32xf32>
    %195 = vector.extract_strided_slice %192 {offsets = [0, 64], sizes = [2, 32], strides = [1, 1]} : vector<2x128xf32> to vector<2x32xf32>
    %196 = vector.extract_strided_slice %192 {offsets = [0, 96], sizes = [2, 32], strides = [1, 1]} : vector<2x128xf32> to vector<2x32xf32>
    %197 = arith.mulf %194, %183 : vector<2x32xf32>
    %198 = arith.mulf %193, %195 : vector<2x32xf32>
    %199 = arith.addf %197, %198 : vector<2x32xf32>
    %200 = math.tanh %199 : vector<2x32xf32>
    %201 = arith.mulf %196, %200 : vector<2x32xf32>
    %c4_46 = arith.constant 4 : index
    %c0_47 = arith.constant 0 : index
    %202 = vector.load %arg6[%c4_46, %c0_47] : memref<8x32xf32, #tpu.memory_space<vmem>>, vector<2x32xf32>
    tpu.vector_store %arg6[%c4_46, %c0_47], %201 {strides = array<i32>} : memref<8x32xf32, #tpu.memory_space<vmem>>, vector<2x32xf32>,
    %203 = arith.truncf %201 : vector<2x32xf32> to vector<2x32xbf16>
    %cst_48 = arith.constant dense<0.000000e+00> : vector<2x128xf32>
    %204 = tpu.matmul %203, %2, %cst_48 {dimension_numbers = #tpu.dot_dimension_numbers<[1], [0], [0], [1], [0, 0, 1, 1], [], []>} : vector<2x32xbf16>, vector<32x128xbf16>, vector<2x128xf32> -> vector<2x128xf32>
    %205 = arith.addf %204, %9 : vector<2x128xf32>
    %206 = math.tanh %205 : vector<2x128xf32>
    %207 = arith.mulf %206, %12 : vector<2x128xf32>
    %208 = arith.addf %207, %18 : vector<2x128xf32>
    %209 = vector.extract_strided_slice %208 {offsets = [0, 0], sizes = [2, 32], strides = [1, 1]} : vector<2x128xf32> to vector<2x32xf32>
    %210 = vector.extract_strided_slice %208 {offsets = [0, 32], sizes = [2, 32], strides = [1, 1]} : vector<2x128xf32> to vector<2x32xf32>
    %211 = vector.extract_strided_slice %208 {offsets = [0, 64], sizes = [2, 32], strides = [1, 1]} : vector<2x128xf32> to vector<2x32xf32>
    %212 = vector.extract_strided_slice %208 {offsets = [0, 96], sizes = [2, 32], strides = [1, 1]} : vector<2x128xf32> to vector<2x32xf32>
    %213 = arith.mulf %210, %199 : vector<2x32xf32>
    %214 = arith.mulf %209, %211 : vector<2x32xf32>
    %215 = arith.addf %213, %214 : vector<2x32xf32>
    %216 = math.tanh %215 : vector<2x32xf32>
    %217 = arith.mulf %212, %216 : vector<2x32xf32>
    %c6_49 = arith.constant 6 : index
    %c0_50 = arith.constant 0 : index
    %218 = vector.load %arg6[%c6_49, %c0_50] : memref<8x32xf32, #tpu.memory_space<vmem>>, vector<2x32xf32>
    tpu.vector_store %arg6[%c6_49, %c0_50], %217 {strides = array<i32>} : memref<8x32xf32, #tpu.memory_space<vmem>>, vector<2x32xf32>,
    %c0_51 = arith.constant 0 : index
    %c0_52 = arith.constant 0 : index
    %219 = vector.load %arg6[%c0_51, %c0_52] : memref<8x32xf32, #tpu.memory_space<vmem>>, vector<8x32xf32>
    %220 = arith.truncf %219 : vector<8x32xf32> to vector<8x32xbf16>
    %cst_53 = arith.constant dense<0.000000e+00> : vector<8x16xf32>
    %221 = tpu.matmul %220, %3, %cst_53 {dimension_numbers = #tpu.dot_dimension_numbers<[1], [0], [0], [1], [0, 0, 1, 1], [], []>} : vector<8x32xbf16>, vector<32x16xbf16>, vector<8x16xf32> -> vector<8x16xf32>
    %222 = arith.addf %221, %15 : vector<8x16xf32>
    %c0_54 = arith.constant 0 : index
    %c0_55 = arith.constant 0 : index
    %223 = vector.load %arg4[%c0_54, %c0_55] : memref<8x16xf32, #tpu.memory_space<vmem>>, vector<8x16xf32>
    tpu.vector_store %arg4[%c0_54, %c0_55], %222 {strides = array<i32>} : memref<8x16xf32, #tpu.memory_space<vmem>>, vector<8x16xf32>,
    return
  }
}

</mosaic_0001>

<bundles_post_ra>
// kernel: lstm_encoder_decoder.1
= control target key start
LH: loop header
LB: loop body
LE: loop exit
PB: predicated region body
PF: predicated region fallthrough
CT: control target
= control target key end

     0   :  { %v1399_v2 = vmov 0   ;;  %v1400_v3 = vmov 0.0   ;;  %vm86_vm0 = vcmask 130048   ;;  %vm1401_vm1 = vmmov 0   ;;  %s1663_s0 = inlined_call_operand.vmem [shape: bf16[16,16], index: 0, kind: input, shape index: {}]   ;;  %s1664_s1 = inlined_call_operand.vmem [shape: bf16[16,256], index: 1, kind: input, shape index: {}]   ;;  %s1665_s2 = inlined_call_operand.vmem [shape: bf16[128,128], index: 2, kind: input, shape index: {}]   ;;  %s1666_s3 = inlined_call_operand.vmem [shape: f32[3,256], index: 3, kind: input, shape index: {}]   ;;  %s1667_s4 = inlined_call_operand.hbm [shape: f32[8,16], index: 4, kind: output, shape index: {}]  }
   0x1   :  { %v1315_v0 = vld [vmem:[%s1664_s1 + $0x4] ss:$8 sps:$4 sm:$0xff]   ;;  %v1317_v1 = vld [vmem:[%s1664_s1] ss:$8 sps:$4 sm:$0xff]   ;;  %122 = vmatprep.mubr.bf16.mxu0 %v1399_v2  ;;  %1205 = vmatprep.subr.bf16.mxu1 %v1400_v3 }
   0x2   :  { %90 = vmatprep.subr.bf16.mxu0 %v1315_v0  ;;  %v1318_v4 = vld [vmem:[%s1663_s0] sm:$0xff]   ;;  %v1448_v6 = vld [vmem:[%s1665_s2 + $0x8] sm:$0xff]   ;;  %1209 = vmatprep.mubr.msk.bf16.mxu1 %vm1401_vm1, %v1400_v3 }
   0x3   :  { %91 = vmatpush1.bf16.msra.mxu0 %v1317_v1  ;;  %v1443_v5 = vld [vmem:[%s1665_s2] sm:$0xff]  }
   0x4   :  { %1213 = vmatprep.subr.bf16.mxu0 %v1400_v3  ;;  %1206 = vmatpush3.bf16.msra.mxu1 %v1443_v5 }
   0x5   :  { %1207 = vmatprep.subr.bf16.mxu1 %v1400_v3 }
   0x6   :  { %1145 = vmatmul.mubr.msk.bf16.vlgmr.msra.gmra.mrb[0].mxu0 %vm86_vm0, %v1318_v4 }
   0x7   :  { %1214 = vmatpush3.bf16.msra.mxu0 %v1443_v5  ;;  %1217 = vmatprep.mubr.msk.bf16.mxu0 %vm1401_vm1, %v1400_v3 }
   0x8   :  { %1215 = vmatprep.subr.bf16.mxu0 %v1400_v3  ;;  %1208 = vmatpush3.bf16.msra.mxu1 %v1448_v6 }
   0x9   :  { %9 = vsyncpa [#allocation5], 0  ;;  %1221 = vmatprep.subr.bf16.mxu1 %v1400_v3  ;;  %v37_v7 = vlaneseq  ;;  %v35_v10 = vld [vmem:[%s1666_s3] ss:$4 sm:$0x3]  ;;  %s1402_s29 = smov 64  }
   0xa   :  { %v1476_v27 = vld [vmem:[%s1666_s3 + $0x5] ss:$0 sm:$0xff]  ;;  %v1481_v29 = vld [vmem:[%s1666_s3 + $0x6] ss:$0 sm:$0xff]  ;;  %s1403_s30 = smov 32   ;;  %vm150_vm2 = vcmask 261120  }
   0xb   :  { %1216 = vmatpush3.bf16.msra.mxu0 %v1448_v6  ;;  %1210 = vmatmul.mubr.bf16.vlgmr.msra.gmra.mrb[0].mxu1 %v1399_v2  ;;  %v38_v8 = vshrl.u32 %v37_v7, 7  ;;  %vm831_vm3 = vcmask 261126   ;;  %vm920_vm4 = vcmask 254976  }
   0xc   :  { %1229 = vmatprep.subr.bf16.mxu0 %v1400_v3  ;;  %1222 = vmatpush3.bf16.msra.mxu1 %v1443_v5 }
   0xd   :  { %1225 = vmatprep.mubr.msk.bf16.mxu1 %vm1401_vm1, %v1400_v3  ;;  %1223 = vmatprep.subr.bf16.mxu1 %v1400_v3  ;;  %v39_v9 = vsub.s32 0, %v38_v8  ;;  %v43_v11 = vsub.s32 1, %v38_v8 }
   0xf   :  { %v40_v12 = vrot.slane %v35_v10, %v39_v9  ;;  %v44_v13 = vrot.slane %v35_v10, %v43_v11 }
  0x10   :  { %1224 = vmatpush3.bf16.msra.mxu1 %v1448_v6 }
  0x11   :  { %1237 = vmatprep.subr.bf16.mxu1 %v1400_v3 }
  0xd9   :  { %v124_v14 = vpop.f32.mrb[0].mxu0 }
  0xda   :  { %v125_v15 = vadd.f32 %v124_v14, %v40_v12  ;;  %v126_v16 = vpop.f32.mrb[1].mxu0 }
  0xdb   :  { %v128_v17 = vpop.f32.mrb[2].mxu0 }
  0xdc   :  { %133 = vst [vmem:[#allocation2] sm:$0xff] %v125_v15  ;;  %v129_v18 = vadd.f32 %v128_v17, %v40_v12  ;;  %v130_v19 = vpop.f32.mrb[3].mxu0 }
  0xdd   :  { %v131_v20 = vadd.f32 %v130_v19, %v44_v13 }
  0xde   :  { %135 = vst [vmem:[#allocation2 + $0x10] sm:$0xff] %v129_v18  ;;  %v188_v21 = vpop.f32.mrb[0].mxu1 }
  0xdf   :  { %136 = vst [vmem:[#allocation2 + $0x18] sm:$0xff] %v131_v20  ;;  %v1211_v22 = vpop.f32.mrb[1].mxu1 }
  0xe0   :  { %v191_v23 = vpop.f32.mrb[2].mxu1 }
  0xe1   :  { %v1212_v24 = vpop.f32.mrb[3].mxu1 }
  0xe3   :  { %v137_v25 = vld [vmem:[#allocation2] sm:$0x3]  ;;  %v215_v45 = vld [vmem:[#allocation2] sm:$0xc]  ;;  %v290_v4 = vld [vmem:[#allocation2] sm:$0x30] }
  0xe4   :  { %v194_v26 = vadd.f32 %v188_v21, %v137_v25 }
  0xe6   :  { %1327 = vtanh.f32 %v194_v26 }
  0xf0   :  { %v1328_v28 = vpop.eup %1327 }
  0xf1   :  { %v196_v30 = vmul.f32 %v1328_v28, %v1476_v27 }
  0xf3   :  { %v197_v31 = vadd.f32 %v1481_v29, %v196_v30  ;;  %v366_v30 = vld [vmem:[#allocation2] sm:$0xc0] }
  0xf5   :  { %200 = vrot.lane.b32.xlu0 %v197_v31, %s1402_s29  ;;  %v198_v34 = vmul.f32 0.0, %v197_v31 }
 0x167   :  { %v201_v32 = vpop.permute.xlu0 %200 }
 0x168   :  { %v203_v33 = vmul.f32 %v201_v32, %v197_v31 }
 0x16a   :  { %205 = vrot.lane.b32.xlu0 %v203_v33, %s1403_s30 }
 0x1dc   :  { %v206_v35 = vpop.permute.xlu0 %205 }
 0x1dd   :  { %v208_v36 = vadd.f32 %v206_v35, %v198_v34 }
 0x1df   :  { %1329 = vtanh.f32 %v208_v36  ;;  %v271_v54 = vrot.slane %v208_v36, 6 }
 0x1e9   :  { %v1330_v37 = vpop.eup %1329 }
 0x1ea   :  { %211 = vrot.lane.b32.xlu1 %v1330_v37, %s1402_s29 }
 0x25c   :  { %v212_v38 = vpop.permute.xlu1 %211 }
 0x25d   :  { %v214_v39 = vmul.f32 %v212_v38, %v197_v31 }
 0x25f   :  { %v216_v40 = vpack.c.bf16 %v214_v39, %v214_v39 }
 0x261   :  { %218 = vrot.lane.b32.xlu1 %v216_v40, %s1403_s30 }
 0x2d3   :  { %v219_v41 = vpop.permute.xlu1 %218 }
 0x2d4   :  { %1218 = vmatmul.mubr.msk.bf16.vlgmr.msra.gmra.mrb[4].mxu0 %vm150_vm2, %v219_v41 }
 0x2d5   :  { %1230 = vmatpush3.bf16.msra.mxu0 %v1443_v5  ;;  %1233 = vmatprep.mubr.msk.bf16.mxu0 %vm1401_vm1, %v1400_v3 }
 0x2d6   :  { %1231 = vmatprep.subr.bf16.mxu0 %v1400_v3 }
 0x2d9   :  { %1232 = vmatpush3.bf16.msra.mxu0 %v1448_v6 }
 0x2da   :  { %1245 = vmatprep.subr.bf16.mxu0 %v1400_v3 }
 0x3a7   :  { %v257_v42 = vpop.f32.mrb[4].mxu0 }
 0x3a8   :  { %v264_v43 = vrot.slane %v257_v42, 6  ;;  %v1219_v44 = vpop.f32.mrb[5].mxu0 }
 0x3a9   :  { %v260_v46 = vpop.f32.mrb[6].mxu0 }
 0x3aa   :  { %v266_v47 = vadd.f32 %v264_v43, %v215_v45  ;;  %v1220_v48 = vpop.f32.mrb[7].mxu0 }
 0x3ac   :  { %1331 = vtanh.f32 %v266_v47 }
 0x3b6   :  { %v1332_v49 = vpop.eup %1331 }
 0x3b7   :  { %v268_v50 = vmul.f32 %v1332_v49, %v1476_v27  ;;  %v442_v49 = vld [vmem:[#allocation2 + $0x10] sm:$0x3] }
 0x3b9   :  { %v269_v51 = vadd.f32 %v1481_v29, %v268_v50 }
 0x3bb   :  { %275 = vrot.lane.b32.xlu0 %v269_v51, %s1402_s29  ;;  %v273_v55 = vmul.f32 %v271_v54, %v269_v51 }
 0x42d   :  { %v276_v52 = vpop.permute.xlu0 %275 }
 0x42e   :  { %v278_v53 = vmul.f32 %v276_v52, %v269_v51 }
 0x430   :  { %280 = vrot.lane.b32.xlu1 %v278_v53, %s1403_s30 }
 0x4a2   :  { %v281_v56 = vpop.permute.xlu1 %280 }
 0x4a3   :  { %v283_v57 = vadd.f32 %v281_v56, %v273_v55 }
 0x4a5   :  { %1333 = vtanh.f32 %v283_v57  ;;  %v347_v15 = vrot.slane %v283_v57, 6 }
 0x4af   :  { %v1334_v58 = vpop.eup %1333 }
 0x4b0   :  { %286 = vrot.lane.b32.xlu0 %v1334_v58, %s1402_s29 }
 0x522   :  { %v287_v59 = vpop.permute.xlu0 %286 }
 0x523   :  { %v289_v60 = vmul.f32 %v287_v59, %v269_v51 }
 0x525   :  { %v291_v61 = vpack.c.bf16 %v289_v60, %v289_v60 }
 0x527   :  { %v293_v62 = vrot.slane %v291_v61, 1 }
 0x529   :  { %294 = vrot.lane.b32.xlu1 %v293_v62, %s1403_s30 }
 0x59b   :  { %v295_v63 = vpop.permute.xlu1 %294 }
 0x59c   :  { %1226 = vmatmul.mubr.msk.bf16.vlgmr.msra.gmra.mrb[4].mxu1 %vm150_vm2, %v295_v63 }
 0x59d   :  { %1238 = vmatpush3.bf16.msra.mxu1 %v1443_v5  ;;  %1241 = vmatprep.mubr.msk.bf16.mxu1 %vm1401_vm1, %v1400_v3 }
 0x59e   :  { %1239 = vmatprep.subr.bf16.mxu1 %v1400_v3 }
 0x5a1   :  { %1240 = vmatpush3.bf16.msra.mxu1 %v1448_v6 }
 0x5a2   :  { %1253 = vmatprep.subr.bf16.mxu1 %v1400_v3 }
 0x66f   :  { %v333_v0 = vpop.f32.mrb[4].mxu1 }
 0x670   :  { %v340_v1 = vrot.slane %v333_v0, 4  ;;  %v1227_v2 = vpop.f32.mrb[5].mxu1 }
 0x671   :  { %v336_v7 = vpop.f32.mrb[6].mxu1 }
 0x672   :  { %v342_v8 = vadd.f32 %v340_v1, %v290_v4  ;;  %v1228_v9 = vpop.f32.mrb[7].mxu1 }
 0x674   :  { %1335 = vtanh.f32 %v342_v8 }
 0x67e   :  { %v1336_v10 = vpop.eup %1335 }
 0x67f   :  { %v344_v11 = vmul.f32 %v1336_v10, %v1476_v27 }
 0x681   :  { %v345_v12 = vadd.f32 %v1481_v29, %v344_v11  ;;  %v515_v11 = vld [vmem:[#allocation2 + $0x10] sm:$0xc] }
 0x683   :  { %351 = vrot.lane.b32.xlu0 %v345_v12, %s1402_s29  ;;  %v349_v16 = vmul.f32 %v347_v15, %v345_v12 }
 0x6f5   :  { %v352_v13 = vpop.permute.xlu0 %351 }
 0x6f6   :  { %v354_v14 = vmul.f32 %v352_v13, %v345_v12 }
 0x6f8   :  { %356 = vrot.lane.b32.xlu1 %v354_v14, %s1403_s30 }
 0x76a   :  { %v357_v17 = vpop.permute.xlu1 %356 }
 0x76b   :  { %v359_v18 = vadd.f32 %v357_v17, %v349_v16 }
 0x76d   :  { %1337 = vtanh.f32 %v359_v18  ;;  %v423_v39 = vrot.slane %v359_v18, 6 }
 0x777   :  { %v1338_v19 = vpop.eup %1337 }
 0x778   :  { %362 = vrot.lane.b32.xlu0 %v1338_v19, %s1402_s29 }
 0x7ea   :  { %v363_v20 = vpop.permute.xlu0 %362 }
 0x7eb   :  { %v365_v21 = vmul.f32 %v363_v20, %v345_v12 }
 0x7ed   :  { %v367_v22 = vpack.c.bf16 %v365_v21, %v365_v21 }
 0x7ef   :  { %v369_v23 = vrot.slane %v367_v22, 2 }
 0x7f1   :  { %370 = vrot.lane.b32.xlu1 %v369_v23, %s1403_s30 }
 0x863   :  { %v371_v24 = vpop.permute.xlu1 %370 }
 0x864   :  { %1234 = vmatmul.mubr.msk.bf16.vlgmr.msra.gmra.mrb[8].mxu0 %vm150_vm2, %v371_v24 }
 0x865   :  { %1246 = vmatpush3.bf16.msra.mxu0 %v1443_v5  ;;  %1249 = vmatprep.mubr.msk.bf16.mxu0 %vm1401_vm1, %v1400_v3 }
 0x866   :  { %1247 = vmatprep.subr.bf16.mxu0 %v1400_v3 }
 0x869   :  { %1248 = vmatpush3.bf16.msra.mxu0 %v1448_v6 }
 0x86a   :  { %1261 = vmatprep.subr.bf16.mxu0 %v1400_v3 }
 0x937   :  { %v409_v25 = vpop.f32.mrb[8].mxu0 }
 0x938   :  { %v416_v26 = vrot.slane %v409_v25, 2  ;;  %v1235_v28 = vpop.f32.mrb[9].mxu0 }
 0x939   :  { %v412_v31 = vpop.f32.mrb[10].mxu0 }
 0x93a   :  { %v418_v32 = vadd.f32 %v416_v26, %v366_v30  ;;  %v1236_v33 = vpop.f32.mrb[11].mxu0 }
 0x93b   :  { %v590_v33 = vld [vmem:[#allocation2 + $0x10] sm:$0x30] }
 0x93c   :  { %1339 = vtanh.f32 %v418_v32 }
 0x946   :  { %v1340_v34 = vpop.eup %1339 }
 0x947   :  { %v420_v35 = vmul.f32 %v1340_v34, %v1476_v27 }
 0x949   :  { %v421_v36 = vadd.f32 %v1481_v29, %v420_v35 }
 0x94b   :  { %427 = vrot.lane.b32.xlu0 %v421_v36, %s1402_s29  ;;  %v425_v40 = vmul.f32 %v423_v39, %v421_v36 }
 0x9bd   :  { %v428_v37 = vpop.permute.xlu0 %427 }
 0x9be   :  { %v430_v38 = vmul.f32 %v428_v37, %v421_v36 }
 0x9c0   :  { %432 = vrot.lane.b32.xlu1 %v430_v38, %s1403_s30 }
 0xa32   :  { %v433_v41 = vpop.permute.xlu1 %432 }
 0xa33   :  { %v435_v42 = vadd.f32 %v433_v41, %v425_v40 }
 0xa35   :  { %1341 = vtanh.f32 %v435_v42  ;;  %v496_v60 = vrot.slane %v435_v42, 6 }
 0xa3f   :  { %v1342_v43 = vpop.eup %1341 }
 0xa40   :  { %438 = vrot.lane.b32.xlu0 %v1342_v43, %s1402_s29 }
 0xab2   :  { %v439_v44 = vpop.permute.xlu0 %438 }
 0xab3   :  { %v441_v45 = vmul.f32 %v439_v44, %v421_v36 }
 0xab5   :  { %v443_v46 = vpack.c.bf16 %v441_v45, %v441_v45 }
 0xab7   :  { %v445_v47 = vrot.slane %v443_v46, 3 }
 0xab9   :  { %446 = vrot.lane.b32.xlu1 %v445_v47, %s1403_s30 }
 0xb2b   :  { %v447_v48 = vpop.permute.xlu1 %446 }
 0xb2c   :  { %1242 = vmatmul.mubr.msk.bf16.vlgmr.msra.gmra.mrb[8].mxu1 %vm150_vm2, %v447_v48 }
 0xb2d   :  { %1254 = vmatpush3.bf16.msra.mxu1 %v1443_v5  ;;  %1257 = vmatprep.mubr.msk.bf16.mxu1 %vm1401_vm1, %v1400_v3 }
 0xb2e   :  { %1255 = vmatprep.subr.bf16.mxu1 %v1400_v3 }
 0xb31   :  { %1256 = vmatpush3.bf16.msra.mxu1 %v1448_v6 }
 0xb32   :  { %1269 = vmatprep.subr.bf16.mxu1 %v1400_v3 }
 0xbff   :  { %v485_v50 = vpop.f32.mrb[8].mxu1 }
 0xc00   :  { %v491_v51 = vadd.f32 %v485_v50, %v442_v49  ;;  %v1243_v52 = vpop.f32.mrb[9].mxu1 }
 0xc01   :  { %v488_v53 = vpop.f32.mrb[10].mxu1 }
 0xc02   :  { %1343 = vtanh.f32 %v491_v51  ;;  %v1244_v54 = vpop.f32.mrb[11].mxu1 }
 0xc0c   :  { %v1344_v55 = vpop.eup %1343 }
 0xc0d   :  { %v493_v56 = vmul.f32 %v1344_v55, %v1476_v27  ;;  %v666_v55 = vld [vmem:[#allocation2 + $0x10] sm:$0xc0] }
 0xc0f   :  { %v494_v57 = vadd.f32 %v1481_v29, %v493_v56 }
 0xc11   :  { %500 = vrot.lane.b32.xlu0 %v494_v57, %s1402_s29  ;;  %v498_v61 = vmul.f32 %v496_v60, %v494_v57 }
 0xc83   :  { %v501_v58 = vpop.permute.xlu0 %500 }
 0xc84   :  { %v503_v59 = vmul.f32 %v501_v58, %v494_v57 }
 0xc86   :  { %505 = vrot.lane.b32.xlu1 %v503_v59, %s1403_s30 }
 0xcf8   :  { %v506_v62 = vpop.permute.xlu1 %505 }
 0xcf9   :  { %v508_v63 = vadd.f32 %v506_v62, %v498_v61 }
 0xcfb   :  { %1345 = vtanh.f32 %v508_v63 }
 0xd05   :  { %v1346_v0 = vpop.eup %1345 }
 0xd06   :  { %511 = vrot.lane.b32.xlu0 %v1346_v0, %s1402_s29 }
 0xd78   :  { %v512_v1 = vpop.permute.xlu0 %511 }
 0xd79   :  { %v514_v2 = vmul.f32 %v512_v1, %v494_v57 }
 0xd7b   :  { %v516_v4 = vpack.c.bf16 %v514_v2, %v514_v2 }
 0xd7d   :  { %518 = vrot.lane.b32.xlu1 %v516_v4, %s1403_s30 }
 0xdef   :  { %v519_v7 = vpop.permute.xlu1 %518 }
 0xdf0   :  { %1250 = vmatmul.mubr.msk.bf16.vlgmr.msra.gmra.mrb[12].mxu0 %vm150_vm2, %v519_v7  ;;  %v1321_v7 = vld [vmem:[%s1665_s2 + $0x10] sm:$0xff]  }
 0xdf1   :  { %1262 = vmatpush3.bf16.msra.mxu0 %v1443_v5  ;;  %1265 = vmatprep.mubr.msk.bf16.mxu0 %vm1401_vm1, %v1400_v3 }
 0xdf2   :  { %1263 = vmatprep.subr.bf16.mxu0 %v1400_v3 }
 0xdf5   :  { %1264 = vmatpush3.bf16.msra.mxu0 %v1448_v6  ;;  %v571_v6 = vrot.slane %v508_v63, 6 }
 0xdf6   :  { %1277 = vmatprep.subr.bf16.mxu0 %v1400_v3 }
 0xec3   :  { %v557_v8 = vpop.f32.mrb[12].mxu0 }
 0xec4   :  { %v564_v9 = vrot.slane %v557_v8, 6  ;;  %v1251_v10 = vpop.f32.mrb[13].mxu0  ;;  %v1322_v8 = vld [vmem:[%s1665_s2 + $0x18] sm:$0xff]  }
 0xec5   :  { %v560_v12 = vpop.f32.mrb[14].mxu0 }
 0xec6   :  { %v566_v13 = vadd.f32 %v564_v9, %v515_v11  ;;  %v1252_v14 = vpop.f32.mrb[15].mxu0 }
 0xec8   :  { %1347 = vtanh.f32 %v566_v13 }
 0xed2   :  { %v1348_v15 = vpop.eup %1347 }
 0xed3   :  { %v568_v5 = vmul.f32 %v1348_v15, %v1476_v27 }
 0xed5   :  { %v569_v16 = vadd.f32 %v1481_v29, %v568_v5 }
 0xed7   :  { %575 = vrot.lane.b32.xlu0 %v569_v16, %s1402_s29  ;;  %v573_v19 = vmul.f32 %v571_v6, %v569_v16 }
 0xf49   :  { %v576_v17 = vpop.permute.xlu0 %575 }
 0xf4a   :  { %v578_v18 = vmul.f32 %v576_v17, %v569_v16  ;;  %v742_v17 = vld [vmem:[#allocation2 + $0x18] sm:$0xc0] }
 0xf4c   :  { %580 = vrot.lane.b32.xlu1 %v578_v18, %s1403_s30 }
 0xfbe   :  { %v581_v20 = vpop.permute.xlu1 %580 }
 0xfbf   :  { %v583_v21 = vadd.f32 %v581_v20, %v573_v19 }
 0xfc1   :  { %1349 = vtanh.f32 %v583_v21  ;;  %v647_v42 = vrot.slane %v583_v21, 6 }
 0xfcb   :  { %v1350_v22 = vpop.eup %1349 }
 0xfcc   :  { %586 = vrot.lane.b32.xlu0 %v1350_v22, %s1402_s29 }
0x103e   :  { %v587_v23 = vpop.permute.xlu0 %586 }
0x103f   :  { %v589_v24 = vmul.f32 %v587_v23, %v569_v16 }
0x1041   :  { %v591_v25 = vpack.c.bf16 %v589_v24, %v589_v24 }
0x1043   :  { %v593_v26 = vrot.slane %v591_v25, 1 }
0x1045   :  { %594 = vrot.lane.b32.xlu1 %v593_v26, %s1403_s30 }
0x10b7   :  { %v595_v28 = vpop.permute.xlu1 %594 }
0x10b8   :  { %1258 = vmatmul.mubr.msk.bf16.vlgmr.msra.gmra.mrb[12].mxu1 %vm150_vm2, %v595_v28 }
0x10b9   :  { %1273 = vmatprep.mubr.msk.bf16.mxu1 %vm1401_vm1, %v1400_v3  ;;  %1270 = vmatpush3.bf16.msra.mxu1 %v1321_v7 }
0x10ba   :  { %1271 = vmatprep.subr.bf16.mxu1 %v1400_v3 }
0x10bd   :  { %1272 = vmatpush3.bf16.msra.mxu1 %v1322_v8 }
0x10be   :  { %1285 = vmatprep.subr.bf16.mxu1 %v1400_v3 }
0x118b   :  { %v633_v30 = vpop.f32.mrb[12].mxu1 }
0x118c   :  { %v640_v31 = vrot.slane %v633_v30, 4  ;;  %v1259_v32 = vpop.f32.mrb[13].mxu1  ;;  %v1323_v30 = vld [vmem:[%s1665_s2 + $0x20] sm:$0xff]  }
0x118d   :  { %v636_v34 = vpop.f32.mrb[14].mxu1 }
0x118e   :  { %v642_v35 = vadd.f32 %v640_v31, %v590_v33  ;;  %v1260_v36 = vpop.f32.mrb[15].mxu1  ;;  %v1324_v31 = vld [vmem:[%s1665_s2 + $0x28] sm:$0xff]  }
0x1190   :  { %1351 = vtanh.f32 %v642_v35 }
0x119a   :  { %v1352_v37 = vpop.eup %1351 }
0x119b   :  { %v644_v38 = vmul.f32 %v1352_v37, %v1476_v27 }
0x119d   :  { %v645_v39 = vadd.f32 %v1481_v29, %v644_v38  ;;  %v1138_v38 = vld [vmem:[%s1666_s3 + $0x1] ss:$0 sm:$0xff] }
0x119f   :  { %651 = vrot.lane.b32.xlu0 %v645_v39, %s1402_s29  ;;  %v649_v43 = vmul.f32 %v647_v42, %v645_v39 }
0x1211   :  { %v652_v40 = vpop.permute.xlu0 %651 }
0x1212   :  { %v654_v41 = vmul.f32 %v652_v40, %v645_v39 }
0x1214   :  { %656 = vrot.lane.b32.xlu1 %v654_v41, %s1403_s30 }
0x1286   :  { %v657_v44 = vpop.permute.xlu1 %656 }
0x1287   :  { %v659_v45 = vadd.f32 %v657_v44, %v649_v43 }
0x1289   :  { %1353 = vtanh.f32 %v659_v45  ;;  %v723_v0 = vrot.slane %v659_v45, 6 }
0x1293   :  { %v1354_v46 = vpop.eup %1353 }
0x1294   :  { %662 = vrot.lane.b32.xlu0 %v1354_v46, %s1402_s29 }
0x1306   :  { %v663_v47 = vpop.permute.xlu0 %662 }
0x1307   :  { %v665_v48 = vmul.f32 %v663_v47, %v645_v39 }
0x1309   :  { %v667_v49 = vpack.c.bf16 %v665_v48, %v665_v48 }
0x130b   :  { %v669_v50 = vrot.slane %v667_v49, 2 }
0x130d   :  { %670 = vrot.lane.b32.xlu1 %v669_v50, %s1403_s30 }
0x137f   :  { %v671_v51 = vpop.permute.xlu1 %670 }
0x1380   :  { %1266 = vmatmul.mubr.msk.bf16.vlgmr.msra.gmra.mrb[16].mxu0 %vm150_vm2, %v671_v51 }
0x1381   :  { %1281 = vmatprep.mubr.msk.bf16.mxu0 %vm1401_vm1, %v1400_v3  ;;  %1278 = vmatpush3.bf16.msra.mxu0 %v1323_v30 }
0x1382   :  { %1279 = vmatprep.subr.bf16.mxu0 %v1400_v3 }
0x1385   :  { %1280 = vmatpush3.bf16.msra.mxu0 %v1324_v31 }
0x1386   :  { %1293 = vmatprep.subr.bf16.mxu0 %v1400_v3 }
0x1453   :  { %v709_v52 = vpop.f32.mrb[16].mxu0 }
0x1454   :  { %v716_v53 = vrot.slane %v709_v52, 2  ;;  %v1267_v54 = vpop.f32.mrb[17].mxu0 }
0x1455   :  { %v712_v56 = vpop.f32.mrb[18].mxu0 }
0x1456   :  { %v718_v57 = vadd.f32 %v716_v53, %v666_v55  ;;  %v1268_v58 = vpop.f32.mrb[19].mxu0 }
0x1458   :  { %1355 = vtanh.f32 %v718_v57 }
0x1462   :  { %v1356_v59 = vpop.eup %1355 }
0x1463   :  { %v720_v60 = vmul.f32 %v1356_v59, %v1476_v27 }
0x1465   :  { %v721_v61 = vadd.f32 %v1481_v29, %v720_v60 }
0x1467   :  { %727 = vrot.lane.b32.xlu0 %v721_v61, %s1402_s29  ;;  %v725_v1 = vmul.f32 %v723_v0, %v721_v61 }
0x14d9   :  { %v728_v62 = vpop.permute.xlu0 %727 }
0x14da   :  { %v730_v63 = vmul.f32 %v728_v62, %v721_v61 }
0x14dc   :  { %732 = vrot.lane.b32.xlu1 %v730_v63, %s1403_s30 }
0x154e   :  { %v733_v2 = vpop.permute.xlu1 %732 }
0x154f   :  { %v735_v4 = vadd.f32 %v733_v2, %v725_v1 }
0x1551   :  { %1357 = vtanh.f32 %v735_v4 }
0x155b   :  { %v1358_v9 = vpop.eup %1357 }
0x155c   :  { %738 = vrot.lane.b32.xlu0 %v1358_v9, %s1402_s29 }
0x15ce   :  { %v739_v10 = vpop.permute.xlu0 %738 }
0x15cf   :  { %v741_v11 = vmul.f32 %v739_v10, %v721_v61 }
0x15d1   :  { %v743_v12 = vpack.c.bf16 %v741_v11, %v741_v11 }
0x15d3   :  { %v745_v13 = vrot.slane %v743_v12, 3 }
0x15d5   :  { %746 = vrot.lane.b32.xlu1 %v745_v13, %s1403_s30 }
0x1647   :  { %v747_v14 = vpop.permute.xlu1 %746 }
0x1648   :  { %1274 = vmatmul.mubr.msk.bf16.vlgmr.msra.gmra.mrb[16].mxu1 %vm150_vm2, %v747_v14 }
0x1649   :  { %1289 = vmatprep.mubr.msk.bf16.mxu1 %vm1401_vm1, %v1400_v3  ;;  %1286 = vmatpush3.bf16.msra.mxu1 %v1323_v30 }
0x164a   :  { %1287 = vmatprep.subr.bf16.mxu1 %v1400_v3 }
0x164d   :  { %1288 = vmatpush3.bf16.msra.mxu1 %v1324_v31 }
0x164e   :  { %1301 = vmatprep.subr.bf16.mxu1 %v1400_v3 }
0x171b   :  { %v797_v15 = vpop.f32.mrb[16].mxu1 }
0x171c   :  { %v804_v5 = vrot.slane %v797_v15, 2  ;;  %v1275_v16 = vpop.f32.mrb[17].mxu1 }
0x171d   :  { %v800_v18 = vpop.f32.mrb[18].mxu1 }
0x171e   :  { %v806_v6 = vadd.f32 %v804_v5, %v742_v17  ;;  %v1276_v19 = vpop.f32.mrb[19].mxu1 }
0x1720   :  { %1359 = vtanh.f32 %v806_v6 }
0x172a   :  { %v1360_v20 = vpop.eup %1359 }
0x172b   :  { %v808_v21 = vmul.f32 %v1360_v20, %v1476_v27 }
0x172d   :  { %v809_v22 = vadd.f32 %v1481_v29, %v808_v21 }
0x172f   :  { %812 = vrot.lane.b32.xlu0 %v809_v22, %s1402_s29  ;;  %v810_v25 = vmul.f32 %v809_v22, %v735_v4 }
0x17a1   :  { %v813_v23 = vpop.permute.xlu0 %812 }
0x17a2   :  { %v815_v24 = vmul.f32 %v813_v23, %v809_v22 }
0x17a4   :  { %817 = vrot.lane.b32.xlu1 %v815_v24, %s1403_s30 }
0x1816   :  { %v818_v26 = vpop.permute.xlu1 %817 }
0x1817   :  { %v820_v28 = vadd.f32 %v818_v26, %v810_v25 }
0x1819   :  { %1361 = vtanh.f32 %v820_v28  ;;  %v897_v49 = vrot.slane %v820_v28, 6  ;;  %v1325_v28 = vld [vmem:[%s1665_s2 + $0x30] sm:$0xff]  }
0x1823   :  { %v1362_v32 = vpop.eup %1361 }
0x1824   :  { %823 = vrot.lane.b32.xlu0 %v1362_v32, %s1402_s29 }
0x1896   :  { %v824_v33 = vpop.permute.xlu0 %823 }
0x1897   :  { %v1598_v34 = vmul.f32 %v824_v33, %v809_v22 }
0x1899   :  { %v833_v35 = vpack.c.bf16 %v1598_v34, %v1598_v34 }
0x189b   :  { %v835_v36 = vrot.slane %v833_v35, 3 }
0x189d   :  { %836 = vrot.lane.b32.xlu1 %v835_v36, %s1403_s30 }
0x190f   :  { %v837_v37 = vpop.permute.xlu1 %836 }
0x1910   :  { %1282 = vmatmul.mubr.msk.bf16.vlgmr.msra.gmra.mrb[20].mxu0 %vm150_vm2, %v837_v37  ;;  %v1140_v37 = vld [vmem:[%s1666_s3 + $0x2] ss:$0 sm:$0xff] }
0x1911   :  { %1294 = vmatpush3.bf16.msra.mxu0 %v1323_v30  ;;  %1297 = vmatprep.mubr.msk.bf16.mxu0 %vm1401_vm1, %v1400_v3  ;;  %v1326_v30 = vld [vmem:[%s1665_s2 + $0x38] sm:$0xff]   ;;  %s1404_s2 = smov [#allocation4]  }
0x1912   :  { %1295 = vmatprep.subr.bf16.mxu0 %v1400_v3  ;;  %s1130_s21 = sshll.u32 %s1404_s2, 4  ;;  %s1131_s21 = int_to_ptr.vmem [resolvable:$true] %s1130_s21 }
0x1913   :  { %s1375_s22 = scalar_lea.vmem %s1131_s21, 128  ;;  %p1380_p1 = scmp.lt.s32.totalorder %s1131_s21, %s1131_s21 }
0x1914   :  { %p1376_p0 = scmp.ne.s32.totalorder %s1131_s21, %s1375_s22  ;;  %p1381_p2 = scmp.lt.s32.totalorder %s1375_s22, %s1375_s22 }
0x1915   :  { %1296 = vmatpush3.bf16.msra.mxu0 %v1324_v31 }
0x1916   :  { %p1382_p3 = por %p1381_p2, %p1380_p1 }
0x1918   :  { %p1383_p4 = pnand %p1382_p3, %p1376_p0 }
0x19e3   :  { %v887_v39 = vpop.f32.mrb[20].mxu0 }
0x19e4   :  { %v888_v40 = vadd.f32 %v1138_v38, %v887_v39  ;;  %v1283_v41 = vpop.f32.mrb[21].mxu0 }
0x19e5   :  { %v890_v42 = vpop.f32.mrb[22].mxu0 }
0x19e6   :  { %1363 = vtanh.f32 %v888_v40  ;;  %v1284_v43 = vpop.f32.mrb[23].mxu0 }
0x19f0   :  { %v1364_v44 = vpop.eup %1363 }
0x19f1   :  { %v894_v45 = vmul.f32 %v1364_v44, %v1476_v27 }
0x19f3   :  { %v895_v46 = vadd.f32 %v1481_v29, %v894_v45 }
0x19f5   :  { %901 = vrot.lane.b32.xlu0 %v895_v46, %s1402_s29  ;;  %v899_v50 = vmul.f32 %v897_v49, %v895_v46 }
0x1a67   :  { %v902_v47 = vpop.permute.xlu0 %901 }
0x1a68   :  { %v904_v48 = vmul.f32 %v902_v47, %v895_v46 }
0x1a6a   :  { %906 = vrot.lane.b32.xlu1 %v904_v48, %s1403_s30 }
0x1adc   :  { %v907_v51 = vpop.permute.xlu1 %906 }
0x1add   :  { %v909_v52 = vadd.f32 %v907_v51, %v899_v50 }
0x1adf   :  { %1365 = vtanh.f32 %v909_v52 }
0x1ae9   :  { %v1366_v53 = vpop.eup %1365 }
0x1aea   :  { %912 = vrot.lane.b32.xlu0 %v1366_v53, %s1402_s29 }
0x1b5c   :  { %v913_v54 = vpop.permute.xlu0 %912 }
0x1b5d   :  { %v915_v55 = vmul.f32 %v913_v54, %v895_v46 }
0x1b5f   :  { %v922_v56 = vpack.c.bf16 %v915_v55, %v915_v55 }
0x1b61   :  { %924 = vrot.lane.b32.xlu1 %v922_v56, %s1403_s30 }
0x1bd3   :  { %v925_v57 = vpop.permute.xlu1 %924 }
0x1bd4   :  { %1290 = vmatmul.mubr.msk.bf16.vlgmr.msra.gmra.mrb[20].mxu1 %vm150_vm2, %v925_v57 }
0x1bd5   :  { %1305 = vmatprep.mubr.msk.bf16.mxu1 %vm1401_vm1, %v1400_v3  ;;  %1302 = vmatpush3.bf16.msra.mxu1 %v1325_v28 }
0x1bd6   :  { %1303 = vmatprep.subr.bf16.mxu1 %v1400_v3 }
0x1bd9   :  { %1304 = vmatpush3.bf16.msra.mxu1 %v1326_v30 }
0x1ca7   :  { %v963_v58 = vpop.f32.mrb[20].mxu1 }
0x1ca8   :  { %v964_v59 = vadd.f32 %v1138_v38, %v963_v58  ;;  %v1291_v60 = vpop.f32.mrb[21].mxu1 }
0x1ca9   :  { %v966_v61 = vpop.f32.mrb[22].mxu1 }
0x1caa   :  { %1367 = vtanh.f32 %v964_v59  ;;  %v1292_v62 = vpop.f32.mrb[23].mxu1 }
0x1cb4   :  { %v1368_v63 = vpop.eup %1367 }
0x1cb5   :  { %v970_v0 = vmul.f32 %v1368_v63, %v1476_v27 }
0x1cb7   :  { %v971_v1 = vadd.f32 %v1481_v29, %v970_v0 }
0x1cb9   :  { %974 = vrot.lane.b32.xlu0 %v971_v1, %s1402_s29  ;;  %v972_v7 = vmul.f32 %v971_v1, %v909_v52 }
0x1d2b   :  { %v975_v2 = vpop.permute.xlu0 %974 }
0x1d2c   :  { %v977_v4 = vmul.f32 %v975_v2, %v971_v1 }
0x1d2e   :  { %979 = vrot.lane.b32.xlu1 %v977_v4, %s1403_s30 }
0x1da0   :  { %v980_v8 = vpop.permute.xlu1 %979 }
0x1da1   :  { %v982_v9 = vadd.f32 %v980_v8, %v972_v7 }
0x1da3   :  { %1369 = vtanh.f32 %v982_v9 }
0x1dad   :  { %v1370_v10 = vpop.eup %1369 }
0x1dae   :  { %985 = vrot.lane.b32.xlu0 %v1370_v10, %s1402_s29 }
0x1e20   :  { %v986_v11 = vpop.permute.xlu0 %985 }
0x1e21   :  { %v988_v12 = vmul.f32 %v986_v11, %v971_v1 }
0x1e23   :  { %v994_v13 = vpack.c.bf16 %v988_v12, %v988_v12 }
0x1e25   :  { %996 = vrot.lane.b32.xlu1 %v994_v13, %s1403_s30 }
0x1e97   :  { %v997_v14 = vpop.permute.xlu1 %996 }
0x1e98   :  { %1298 = vmatmul.mubr.msk.bf16.vlgmr.msra.gmra.mrb[24].mxu0 %vm150_vm2, %v997_v14 }
0x1f6b   :  { %v1035_v15 = vpop.f32.mrb[24].mxu0 }
0x1f6c   :  { %v1036_v5 = vadd.f32 %v1138_v38, %v1035_v15  ;;  %v1299_v16 = vpop.f32.mrb[25].mxu0 }
0x1f6d   :  { %v1038_v17 = vpop.f32.mrb[26].mxu0 }
0x1f6e   :  { %1371 = vtanh.f32 %v1036_v5  ;;  %v1300_v18 = vpop.f32.mrb[27].mxu0 }
0x1f78   :  { %v1372_v6 = vpop.eup %1371 }
0x1f79   :  { %v1042_v19 = vmul.f32 %v1372_v6, %v1476_v27 }
0x1f7b   :  { %v1043_v20 = vadd.f32 %v1481_v29, %v1042_v19 }
0x1f7d   :  { %1046 = vrot.lane.b32.xlu0 %v1043_v20, %s1402_s29  ;;  %v1044_v23 = vmul.f32 %v1043_v20, %v982_v9 }
0x1fef   :  { %v1047_v21 = vpop.permute.xlu0 %1046 }
0x1ff0   :  { %v1049_v22 = vmul.f32 %v1047_v21, %v1043_v20 }
0x1ff2   :  { %1051 = vrot.lane.b32.xlu1 %v1049_v22, %s1403_s30 }
0x1ff6   :  { %828 = vrot.lane.b32.xlu1 %v1598_v34, %s1403_s30 }
0x1ffa   :  { %990 = vrot.lane.b32.xlu1 %v988_v12, %s1403_s30 }
0x2064   :  { %v1052_v24 = vpop.permute.xlu1 %1051 }
0x2065   :  { %v1054_v25 = vadd.f32 %v1052_v24, %v1044_v23 }
0x2067   :  { %1373 = vtanh.f32 %v1054_v25 }
0x2068   :  { %v829_v26 = vpop.permute.xlu1 %828 }
0x2069   :  { %832 = vst.msk [vmem:[#allocation3 - $0x6] sm:$0xc0] %vm831_vm3, %v829_v26 }
0x206c   :  { %v991_v27 = vpop.permute.xlu1 %990 }
0x206d   :  { %993 = vst.msk [vmem:[#allocation3 + $0x4] sm:$0x3] %vm920_vm4, %v991_v27 }
0x2071   :  { %v1374_v29 = vpop.eup %1373 }
0x2072   :  { %1057 = vrot.lane.b32.xlu0 %v1374_v29, %s1402_s29 }
0x2076   :  { %917 = vrot.lane.b32.xlu0 %v915_v55, %s1403_s30 }
0x20e4   :  { %v1058_v31 = vpop.permute.xlu0 %1057 }
0x20e5   :  { %v1060_v32 = vmul.f32 %v1058_v31, %v1043_v20 }
0x20e7   :  { %1062 = vrot.lane.b32.xlu0 %v1060_v32, %s1403_s30 }
0x20e8   :  { %v918_v33 = vpop.permute.xlu0 %917 }
0x20e9   :  { %921 = vst.msk [vmem:[#allocation3 + $0x2] sm:$0x3] %vm920_vm4, %v918_v33 }
0x2159   :  { %v1063_v34 = vpop.permute.xlu0 %1062 }
0x215a   :  { %1065 = vst.msk [vmem:[#allocation3 + $0x6] sm:$0x3] %vm920_vm4, %v1063_v34 }
0x2161   :  { %v1066_v35 = vld [vmem:[#allocation3] sm:$0xff] }
0x2162   :  { %v1067_v36 = vpack.c.bf16 %v1066_v35, %v1066_v35 }
0x2164   :  { %1306 = vmatmul.mubr.msk.bf16.vlgmr.msra.gmra.mrb[24].mxu1 %vm150_vm2, %v1067_v36 }
0x2237   :  { %v1117_v3 = vpop.f32.mrb[24].mxu1 }
0x2238   :  { %v1118_v38 = vadd.f32 %v1140_v37, %v1117_v3  ;;  %v1307_v39 = vpop.f32.mrb[25].mxu1 }
0x2239   :  { %v1120_v40 = vpop.f32.mrb[26].mxu1 }
0x223a   :  { %1123 = vst.msk [vmem:[#allocation4] sm:$0xff] %vm86_vm0, %v1118_v38  ;;  %v1308_v41 = vpop.f32.mrb[27].mxu1 }
0x223b   :  { %1386 = shalt.err (!%p1383_p4)
}
0x223c   :  { %s1387_s3 = scalar_lea.hbm %s1667_s4, 128 }
0x223d   :  { %p1388_p5 = scmp.ne.s32.totalorder %s1667_s4, %s1387_s3  ;;  %p1391_p6 = scmp.lt.u32.totalorder %s1387_s3, %s1667_s4 }
0x223f   :  { %p1393_p7 = pnand %p1391_p6, %p1388_p5 }
0x2241   :  { %1396 = shalt.err (!%p1393_p7)
}
0x2242   :  { %1133 = dma.vmem_to_hbm [thread:$0]  %s1131_s21, 128, %s1667_s4, [#allocation5]  }
0x2243   :  { %1397 = dma.done.wait [#allocation5], 128  }
0x2244   :  { %1398 = vsyncadd [#allocation5], 4294967168 }
0x2245   :  { %1137 = vsyncpa [#allocation5], 1 }

</bundles_post_ra>
